<compile_context>
chip_gen: v5e
topology: v5e:2x2
jax: 0.10.0
libtpu: 0.0.40
codegen_flags: <defaults>
</compile_context>

<pallas_src>
import jax
import jax.numpy as jnp
from jax.experimental import pallas as pl
from jax.experimental.pallas import tpu as pltpu

HIDDEN_LAYER = 32
IN_FEATURES = 4
OUT_FEATURES = 2
LANE = 128
DEFAULT_TILE_B = 64 * 1024  # 65536 lanes/step; ~8 MiB of double-buffered blocks


def _round_up(n, m):
    return ((n + m - 1) // m) * m


def mlp_kernel(x_ref, w1_ref, b1_ref, w2_ref, b2_ref, o_ref):
    # x_ref : (4, TB)   input block, batch on the lane axis
    # w1_ref: (32, 4)   W1 in PyTorch (out, in) layout
    # b1_ref: (32, 1)
    # w2_ref: (2, 32)   W2 in PyTorch (out, in) layout
    # b2_ref: (2, 1)
    # o_ref : (2, TB)   lane-dense output block
    x = x_ref[...]                                   # (4, TB)
    w1 = w1_ref[...]                                 # (32, 4)

    # Layer 1: VPU broadcast-MAC over the 4 input features (K=4 is far too
    # small for the MXU; VPU slots are otherwise idle in this mem-bound kernel).
    h = w1[:, 0:1] * x[0:1, :]                       # (32,1)*(1,TB) -> (32,TB)
    for k in range(1, IN_FEATURES):
        h = h + w1[:, k:k + 1] * x[k:k + 1, :]
    h = jnp.maximum(h + b1_ref[...], 0.0)            # bias + ReLU, (32, TB)

    # Layer 2: (2,32) @ (32,TB) -> (2,TB); lane-wide output, MXU handles it.
    y = jnp.dot(w2_ref[...], h, preferred_element_type=jnp.float32)
    y = y + b2_ref[...]                              # (2, TB)
    o_ref[...] = y.astype(o_ref.dtype)


def network_forward_fm(xT, w1, b1, w2, b2, *, tile_b=DEFAULT_TILE_B):
    """Feature-major forward pass (no layout copies).

    xT : (4, B) float32   -- batch on the last axis
    w1 : (32, 4), b1: (32,)   -- PyTorch nn.Linear(4, 32) parameter layout
    w2 : (2, 32), b2: (2,)    -- PyTorch nn.Linear(32, 2) parameter layout
    returns (2, B)
    """
    F, B = xT.shape
    assert F == IN_FEATURES

    # Pad the batch only to the 128-lane granule (NOT to a multiple of the
    # tile); the grid handles a partial tail block via pl.cdiv.
    Bp = _round_up(B, LANE)
    if Bp != B:
        xT = jnp.pad(xT, ((0, 0), (0, Bp - B)))

    tb = min(_round_up(max(tile_b, LANE), LANE), Bp)
    grid = (pl.cdiv(Bp, tb),)

    b1c = b1.reshape(HIDDEN_LAYER, 1)
    b2c = b2.reshape(OUT_FEATURES, 1)

    # Advisory cost: ~24 B and ~384 flops per batch column -> memory bound.
    cost = pl.CostEstimate(
        flops=2 * Bp * (IN_FEATURES * HIDDEN_LAYER + HIDDEN_LAYER * OUT_FEATURES),
        transcendentals=0,
        bytes_accessed=4 * Bp * (IN_FEATURES + OUT_FEATURES)
        + 4 * (HIDDEN_LAYER * IN_FEATURES + HIDDEN_LAYER
               + OUT_FEATURES * HIDDEN_LAYER + OUT_FEATURES),
    )

    yT = pl.pallas_call(
        mlp_kernel,
        out_shape=jax.ShapeDtypeStruct((OUT_FEATURES, Bp), xT.dtype),
        grid_spec=pl.GridSpec(
            grid=grid,
            in_specs=[
                # Streamed input: (4, tb) blocks along the batch/lane axis.
                pl.BlockSpec((IN_FEATURES, tb), lambda i: (0, i)),
                # Tiny weights/biases: full-block, grid-invariant -> VMEM resident.
                pl.BlockSpec((HIDDEN_LAYER, IN_FEATURES), lambda i: (0, 0)),
                pl.BlockSpec((HIDDEN_LAYER, 1), lambda i: (0, 0)),
                pl.BlockSpec((OUT_FEATURES, HIDDEN_LAYER), lambda i: (0, 0)),
                pl.BlockSpec((OUT_FEATURES, 1), lambda i: (0, 0)),
            ],
            out_specs=pl.BlockSpec((OUT_FEATURES, tb), lambda i: (0, i)),
        ),
        compiler_params=pltpu.CompilerParams(
            # Batch axis shards across TensorCores on megacore parts (v7x).
            dimension_semantics=("parallel",),
            # Let XLA fuse a caller-side transpose/pad into the x operand
            # instead of materializing an extra HBM copy.
            allow_input_fusion=[True, False, False, False, False],
        ),
        cost_estimate=cost,
    )(xT, w1, b1c, w2, b2c)

    return yT[:, :B]                                 # (2, B)


def network_forward(x, w1, b1, w2, b2, *, tile_b=DEFAULT_TILE_B):
    """PyTorch-layout forward pass of `Network`.

    x: (B, 4) float32, returns (B, 2). This wrapper is pure layout plumbing;
    layout-aware callers should use `network_forward_fm` to avoid the
    transpose round-trips entirely.
    """
    B, F = x.shape
    assert F == IN_FEATURES
    yT = network_forward_fm(x.T, w1, b1, w2, b2, tile_b=tile_b)
    return yT.T                                      # (B, 2)


def init_params(key):
    """Deterministic init mimicking PyTorch nn.Linear default
    U(-1/sqrt(fan_in), +1/sqrt(fan_in)); weights in (out, in) layout."""
    k1, k2, k3, k4 = jax.random.split(key, 4)
    bound1 = 1.0 / jnp.sqrt(IN_FEATURES)
    bound2 = 1.0 / jnp.sqrt(HIDDEN_LAYER)
    w1 = jax.random.uniform(k1, (HIDDEN_LAYER, IN_FEATURES), jnp.float32,
                            minval=-bound1, maxval=bound1)
    b1 = jax.random.uniform(k2, (HIDDEN_LAYER,), jnp.float32,
                            minval=-bound1, maxval=bound1)
    w2 = jax.random.uniform(k3, (OUT_FEATURES, HIDDEN_LAYER), jnp.float32,
                            minval=-bound2, maxval=bound2)
    b2 = jax.random.uniform(k4, (OUT_FEATURES,), jnp.float32,
                            minval=-bound2, maxval=bound2)
    return w1, b1, w2, b2


def reference_forward(x, w1, b1, w2, b2):
    h = jnp.maximum(x @ w1.T + b1, 0.0)
    return h @ w2.T + b2


if __name__ == "__main__":
    key = jax.random.PRNGKey(0)
    kx, kp = jax.random.split(key)
    w1, b1, w2, b2 = init_params(kp)

    # Small demo batch through the PyTorch-layout wrapper (single grid step).
    B = 16
    x = jax.random.normal(kx, (B, IN_FEATURES), jnp.float32)
    out = jax.block_until_ready(network_forward(x, w1, b1, w2, b2))
    ref = reference_forward(x, w1, b1, w2, b2)
    assert out.shape == (B, OUT_FEATURES)
    assert jnp.allclose(out, ref, atol=1e-5, rtol=1e-5), "mismatch vs JAX reference"

    # Exercise the multi-step grid with a clipped (non-divisible) tail block.
    B2 = 300                                          # Bp=384, tb=256 -> grid=2
    x2 = jax.random.normal(jax.random.PRNGKey(1), (B2, IN_FEATURES), jnp.float32)
    out2 = jax.block_until_ready(network_forward(x2, w1, b1, w2, b2, tile_b=256))
    ref2 = reference_forward(x2, w1, b1, w2, b2)
    assert out2.shape == (B2, OUT_FEATURES)
    assert jnp.allclose(out2, ref2, atol=1e-5, rtol=1e-5), "mismatch (tiled path)"

    # Feature-major entry point (no wrapper transposes at all).
    out_fm = jax.block_until_ready(network_forward_fm(x.T, w1, b1, w2, b2))
    assert out_fm.shape == (OUT_FEATURES, B)
    assert jnp.allclose(out_fm.T, ref, atol=1e-5, rtol=1e-5), "mismatch (fm path)"

    print("KERNEL_OK")
</pallas_src>

<mosaic_0001>
module attributes {stable_mosaic.version = 11 : i64} {
  func.func @mlp_kernel(%arg0: i32, %arg1: memref<4x128xf32, #tpu.memory_space<vmem>>, %arg2: memref<32x4xf32, #tpu.memory_space<vmem>>, %arg3: memref<32x1xf32, #tpu.memory_space<vmem>>, %arg4: memref<2x32xf32, #tpu.memory_space<vmem>>, %arg5: memref<2x1xf32, #tpu.memory_space<vmem>>, %arg6: memref<2x128xf32, #tpu.memory_space<vmem>>) attributes {dimension_semantics = [#tpu.dimension_semantics<parallel>], iteration_bounds = array<i64: 1>, scalar_prefetch = 0 : i64, scratch_operands = 0 : i64, tpu.core_type = #tpu.core_type<tc>, window_params = [{transform_indices = @transform_0, window_bounds = array<i64: 4, 128>}, {pipeline_mode = #tpu.pipeline_mode<synchronous>, transform_indices = @transform_1, window_bounds = array<i64: 32, 4>}, {pipeline_mode = #tpu.pipeline_mode<synchronous>, transform_indices = @transform_2, window_bounds = array<i64: 32, 1>}, {pipeline_mode = #tpu.pipeline_mode<synchronous>, transform_indices = @transform_3, window_bounds = array<i64: 2, 32>}, {pipeline_mode = #tpu.pipeline_mode<synchronous>, transform_indices = @transform_4, window_bounds = array<i64: 2, 1>}, {transform_indices = @transform_5, window_bounds = array<i64: 2, 128>}]} {
    %c0 = arith.constant 0 : index
    %c0_0 = arith.constant 0 : index
    %0 = vector.load %arg1[%c0, %c0_0] : memref<4x128xf32, #tpu.memory_space<vmem>>, vector<4x128xf32>
    %c0_1 = arith.constant 0 : index
    %c0_2 = arith.constant 0 : index
    %1 = vector.load %arg2[%c0_1, %c0_2] : memref<32x4xf32, #tpu.memory_space<vmem>>, vector<32x4xf32>
    %2 = vector.extract_strided_slice %1 {offsets = [0, 0], sizes = [32, 1], strides = [1, 1]} : vector<32x4xf32> to vector<32x1xf32>
    %3 = vector.extract_strided_slice %0 {offsets = [0, 0], sizes = [1, 128], strides = [1, 1]} : vector<4x128xf32> to vector<1x128xf32>
    %4 = vector.broadcast %2 : vector<32x1xf32> to vector<32x128xf32>
    %5 = vector.broadcast %3 : vector<1x128xf32> to vector<32x128xf32>
    %6 = arith.mulf %4, %5 : vector<32x128xf32>
    %7 = vector.extract_strided_slice %1 {offsets = [0, 1], sizes = [32, 1], strides = [1, 1]} : vector<32x4xf32> to vector<32x1xf32>
    %8 = vector.extract_strided_slice %0 {offsets = [1, 0], sizes = [1, 128], strides = [1, 1]} : vector<4x128xf32> to vector<1x128xf32>
    %9 = vector.broadcast %7 : vector<32x1xf32> to vector<32x128xf32>
    %10 = vector.broadcast %8 : vector<1x128xf32> to vector<32x128xf32>
    %11 = arith.mulf %9, %10 : vector<32x128xf32>
    %12 = arith.addf %6, %11 : vector<32x128xf32>
    %13 = vector.extract_strided_slice %1 {offsets = [0, 2], sizes = [32, 1], strides = [1, 1]} : vector<32x4xf32> to vector<32x1xf32>
    %14 = vector.extract_strided_slice %0 {offsets = [2, 0], sizes = [1, 128], strides = [1, 1]} : vector<4x128xf32> to vector<1x128xf32>
    %15 = vector.broadcast %13 : vector<32x1xf32> to vector<32x128xf32>
    %16 = vector.broadcast %14 : vector<1x128xf32> to vector<32x128xf32>
    %17 = arith.mulf %15, %16 : vector<32x128xf32>
    %18 = arith.addf %12, %17 : vector<32x128xf32>
    %19 = vector.extract_strided_slice %1 {offsets = [0, 3], sizes = [32, 1], strides = [1, 1]} : vector<32x4xf32> to vector<32x1xf32>
    %20 = vector.extract_strided_slice %0 {offsets = [3, 0], sizes = [1, 128], strides = [1, 1]} : vector<4x128xf32> to vector<1x128xf32>
    %21 = vector.broadcast %19 : vector<32x1xf32> to vector<32x128xf32>
    %22 = vector.broadcast %20 : vector<1x128xf32> to vector<32x128xf32>
    %23 = arith.mulf %21, %22 : vector<32x128xf32>
    %24 = arith.addf %18, %23 : vector<32x128xf32>
    %c0_3 = arith.constant 0 : index
    %c0_4 = arith.constant 0 : index
    %25 = vector.load %arg3[%c0_3, %c0_4] : memref<32x1xf32, #tpu.memory_space<vmem>>, vector<32x1xf32>
    %26 = vector.broadcast %25 : vector<32x1xf32> to vector<32x128xf32>
    %27 = arith.addf %24, %26 : vector<32x128xf32>
    %cst = arith.constant 0.000000e+00 : f32
    %28 = vector.broadcast %cst : f32 to vector<32x128xf32>
    %29 = arith.maximumf %27, %28 : vector<32x128xf32>
    %c0_5 = arith.constant 0 : index
    %c0_6 = arith.constant 0 : index
    %30 = vector.load %arg4[%c0_5, %c0_6] : memref<2x32xf32, #tpu.memory_space<vmem>>, vector<2x32xf32>
    %cst_7 = arith.constant dense<0.000000e+00> : vector<2x128xf32>
    %31 = tpu.matmul %30, %29, %cst_7 {dimension_numbers = #tpu.dot_dimension_numbers<[1], [0], [0], [1], [0, 0, 1, 1], [], []>} : vector<2x32xf32>, vector<32x128xf32>, vector<2x128xf32> -> vector<2x128xf32>
    %c0_8 = arith.constant 0 : index
    %c0_9 = arith.constant 0 : index
    %32 = vector.load %arg5[%c0_8, %c0_9] : memref<2x1xf32, #tpu.memory_space<vmem>>, vector<2x1xf32>
    %33 = vector.broadcast %32 : vector<2x1xf32> to vector<2x128xf32>
    %34 = arith.addf %31, %33 : vector<2x128xf32>
    %c0_10 = arith.constant 0 : index
    %c0_11 = arith.constant 0 : index
    %35 = vector.load %arg6[%c0_10, %c0_11] : memref<2x128xf32, #tpu.memory_space<vmem>>, vector<2x128xf32>
    tpu.vector_store %arg6[%c0_10, %c0_11], %34 {strides = array<i32>} : memref<2x128xf32, #tpu.memory_space<vmem>>, vector<2x128xf32>,
    return
  }
  func.func @transform_0(%arg0: i32) -> (i32, i32) {
    %c0_i32 = arith.constant 0 : i32
    %c0_i32_0 = arith.constant 0 : i32
    return %c0_i32, %arg0 : i32, i32
  }
  func.func @transform_1(%arg0: i32) -> (i32, i32) {
    %c0_i32 = arith.constant 0 : i32
    %c0_i32_0 = arith.constant 0 : i32
    %c0_i32_1 = arith.constant 0 : i32
    return %c0_i32, %c0_i32_0 : i32, i32
  }
  func.func @transform_2(%arg0: i32) -> (i32, i32) {
    %c0_i32 = arith.constant 0 : i32
    %c0_i32_0 = arith.constant 0 : i32
    %c0_i32_1 = arith.constant 0 : i32
    return %c0_i32, %c0_i32_0 : i32, i32
  }
  func.func @transform_3(%arg0: i32) -> (i32, i32) {
    %c0_i32 = arith.constant 0 : i32
    %c0_i32_0 = arith.constant 0 : i32
    %c0_i32_1 = arith.constant 0 : i32
    return %c0_i32, %c0_i32_0 : i32, i32
  }
  func.func @transform_4(%arg0: i32) -> (i32, i32) {
    %c0_i32 = arith.constant 0 : i32
    %c0_i32_0 = arith.constant 0 : i32
    %c0_i32_1 = arith.constant 0 : i32
    return %c0_i32, %c0_i32_0 : i32, i32
  }
  func.func @transform_5(%arg0: i32) -> (i32, i32) {
    %c0_i32 = arith.constant 0 : i32
    %c0_i32_0 = arith.constant 0 : i32
    return %c0_i32, %arg0 : i32, i32
  }
}

</mosaic_0001>

<bundles_post_ra>
// kernel: tpu_custom_call.1
= control target key start
LH: loop header
LB: loop body
LE: loop exit
PB: predicated region body
PF: predicated region fallthrough
CT: control target
= control target key end

     0   :  { %v255_v2 = vmov 2   ;;  %v256_v3 = vmov 0   ;;  %s326_s0 = inlined_call_operand.vmem [shape: f32[4,128], index: 0, kind: input, shape index: {}]   ;;  %s327_s1 = inlined_call_operand.vmem [shape: f32[32,4], index: 1, kind: input, shape index: {}]   ;;  %s328_s2 = inlined_call_operand.vmem [shape: f32[32,1], index: 2, kind: input, shape index: {}]   ;;  %s329_s3 = inlined_call_operand.vmem [shape: f32[2,32], index: 3, kind: input, shape index: {}]   ;;  %s330_s4 = inlined_call_operand.vmem [shape: f32[2,1], index: 4, kind: input, shape index: {}]   ;;  %s331_s5 = inlined_call_operand.hbm [shape: f32[2,128], index: 5, kind: output, shape index: {}]  }
   0x1   :  { %v25_v0 = vld [vmem:[%s327_s1 + $0x18] sm:$0xff]  ;;  %v24_v1 = vld [vmem:[%s327_s1 + $0x10] sm:$0xff]  ;;  %216 = vset.pattern.permute.xlu2 %v255_v2  ;;  %214 = vset.pattern.permute.xlu1 %v256_v3 }
   0x2   :  { %10 = vsyncpa [#allocation3], 0  ;;  %212 = vset.pattern.permute.xlu0 %v256_v3  ;;  %89 = vperm.xlu2 %216, %v25_v0   ;;  %v23_v4 = vld [vmem:[%s327_s1 + $0x8] sm:$0xff]  ;;  %v257_v5 = vmov 1   ;;  %v258_v6 = vmov 3   ;;  %v22_v7 = vld [vmem:[%s327_s1] sm:$0xff] }
   0x3   :  { %43 = vperm.xlu0 %212, %v25_v0   ;;  %38 = vperm.xlu1 %214, %v24_v1   ;;  %v127_v8 = vld [vmem:[%s328_s2 + $0x8] sm:$0xff]  ;;  %v129_v9 = vld [vmem:[%s328_s2 + $0x18] sm:$0xff]  ;;  %v128_v10 = vld [vmem:[%s328_s2 + $0x10] sm:$0xff]  ;;  %vm165_vm0 = vcmask 261120   ;;  %s197_s15 = sshll.u32 %s331_s5, 4  ;;  %s198_s15 = int_to_ptr.hbm [resolvable:$true] %s197_s15 }
   0x4   :  { %v126_v11 = vld [vmem:[%s328_s2] sm:$0xff] }
   0x5   :  { %v159_v12 = vld [vmem:[%s330_s4] sm:$0x3]  ;;  %s259_s4 = smov [#allocation2]  }
   0x6   :  { %v21_v19 = vld [vmem:[%s326_s0] sm:$0xf]  ;;  %s195_s12 = sshll.u32 %s259_s4, 4  ;;  %s196_s12 = int_to_ptr.vmem [resolvable:$true] %s195_s12 }
   0x7   :  { %v67_v20 = vperm.slane %v21_v19, 1  ;;  %v46_v21 = vperm.slane %v21_v19, 0  ;;  %v92_v26 = vperm.slane %v21_v19, 2  ;;  %v117_v31 = vperm.slane %v21_v19, 3 }
   0xa   :  { %217 = vset.pattern.permute.xlu2 %v256_v3 }
   0xb   :  { %213 = vset.pattern.permute.xlu0 %v257_v5  ;;  %215 = vset.pattern.permute.xlu1 %v257_v5 }
   0xc   :  { %64 = vperm.xlu0 %213, %v25_v0   ;;  %60 = vperm.xlu1 %215, %v24_v1  }
   0xd   :  { %33 = vperm.xlu2 %217, %v23_v4  }
  0x14   :  { %219 = vset.pattern.permute.xlu0 %v258_v6  ;;  %56 = vperm.xlu1 %215, %v23_v4  }
  0x15   :  { %218 = vset.pattern.permute.xlu2 %v255_v2  ;;  %114 = vperm.xlu0 %219, %v25_v0  }
  0x16   :  { %85 = vperm.xlu2 %218, %v24_v1  }
  0x1c   :  { %220 = vset.pattern.permute.xlu1 %v256_v3 }
  0x1d   :  { %28 = vperm.xlu1 %220, %v22_v7   ;;  %224 = vset.pattern.permute.xlu0 %v255_v2 }
  0x1e   :  { %221 = vset.pattern.permute.xlu2 %v257_v5  ;;  %77 = vperm.xlu0 %224, %v22_v7  }
  0x1f   :  { %52 = vperm.xlu2 %221, %v22_v7  }
  0x25   :  { %222 = vset.pattern.permute.xlu1 %v255_v2 }
  0x26   :  { %81 = vperm.xlu1 %222, %v23_v4   ;;  %227 = vset.pattern.permute.xlu0 %v256_v3 }
  0x27   :  { %223 = vset.pattern.permute.xlu2 %v258_v6  ;;  %137 = vperm.xlu0 %227, %v127_v8  }
  0x28   :  { %110 = vperm.xlu2 %223, %v24_v1  }
  0x2e   :  { %225 = vset.pattern.permute.xlu1 %v258_v6 }
  0x2f   :  { %106 = vperm.xlu1 %225, %v23_v4  }
  0x30   :  { %226 = vset.pattern.permute.xlu2 %v256_v3 }
  0x31   :  { %147 = vperm.xlu2 %226, %v129_v9  }
  0x37   :  { %102 = vperm.xlu1 %225, %v22_v7  }
  0x39   :  { %142 = vperm.xlu2 %226, %v128_v10   ;;  %v158_v10 = vld [vmem:[%s329_s3] sm:$0x3] }
  0x3f   :  { %228 = vset.pattern.permute.xlu1 %v256_v3 }
  0x40   :  { %132 = vperm.xlu1 %228, %v126_v11  }
  0x41   :  { %162 = vperm.xlu2 %226, %v159_v12  }
  0x5c   :  { %v90_v13 = vpop.permute.xlu2 %89 }
  0x5d   :  { %v96_v29 = vmul.f32 %v92_v26, %v90_v13 }
  0x67   :  { %v34_v14 = vpop.permute.xlu2 %33 }
  0x68   :  { %v48_v53 = vmul.f32 %v46_v21, %v34_v14 }
  0x70   :  { %v86_v15 = vpop.permute.xlu2 %85 }
  0x71   :  { %v95_v37 = vmul.f32 %v92_v26, %v86_v15 }
  0x75   :  { %v39_v16 = vpop.permute.xlu1 %38  ;;  %v44_v17 = vpop.permute.xlu0 %43 }
  0x76   :  { %v50_v24 = vmul.f32 %v46_v21, %v44_v17  ;;  %v49_v34 = vmul.f32 %v46_v21, %v39_v16 }
  0x79   :  { %v53_v18 = vpop.permute.xlu2 %52 }
  0x7a   :  { %v68_v62 = vmul.f32 %v67_v20, %v53_v18 }
  0x7e   :  { %v65_v22 = vpop.permute.xlu0 %64  ;;  %v61_v23 = vpop.permute.xlu1 %60 }
  0x7f   :  { %v71_v25 = vmul.f32 %v67_v20, %v65_v22  ;;  %v70_v30 = vmul.f32 %v67_v20, %v61_v23 }
  0x81   :  { %v75_v28 = vadd.f32 %v71_v25, %v50_v24  ;;  %v74_v38 = vadd.f32 %v70_v30, %v49_v34 }
  0x82   :  { %v111_v27 = vpop.permute.xlu2 %110 }
  0x83   :  { %v100_v36 = vadd.f32 %v96_v29, %v75_v28  ;;  %v120_v42 = vmul.f32 %v117_v31, %v111_v27  ;;  %v99_v44 = vadd.f32 %v95_v37, %v74_v38 }
  0x85   :  { %v124_v46 = vadd.f32 %v120_v42, %v99_v44 }
  0x86   :  { %v57_v32 = vpop.permute.xlu1 %56 }
  0x87   :  { %v115_v33 = vpop.permute.xlu0 %114  ;;  %v69_v52 = vmul.f32 %v67_v20, %v57_v32 }
  0x88   :  { %v121_v35 = vmul.f32 %v117_v31, %v115_v33 }
  0x89   :  { %v73_v55 = vadd.f32 %v69_v52, %v48_v53 }
  0x8a   :  { %v125_v39 = vadd.f32 %v121_v35, %v100_v36 }
  0x8b   :  { %v148_v40 = vpop.permute.xlu2 %147 }
  0x8c   :  { %v153_v41 = vadd.f32 %v148_v40, %v125_v39 }
  0x8e   :  { %v157_v43 = vmax.f32 %v153_v41, 0.0 }
  0x8f   :  { %v29_v45 = vpop.permute.xlu1 %28 }
  0x90   :  { %181 = vmatpush.msra.mxu0 %v157_v43  ;;  %v78_v51 = vpop.permute.xlu0 %77  ;;  %v47_v63 = vmul.f32 %v46_v21, %v29_v45 }
  0x91   :  { %v93_v3 = vmul.f32 %v92_v26, %v78_v51 }
  0x92   :  { %v72_v2 = vadd.f32 %v68_v62, %v47_v63 }
  0x93   :  { %v143_v47 = vpop.permute.xlu2 %142 }
  0x94   :  { %v152_v48 = vadd.f32 %v143_v47, %v124_v46  ;;  %v97_v5 = vadd.f32 %v93_v3, %v72_v2 }
  0x96   :  { %v156_v49 = vmax.f32 %v152_v48, 0.0 }
  0x98   :  { %182 = vmatpush.msra.mxu0 %v156_v49  ;;  %v82_v50 = vpop.permute.xlu1 %81 }
  0x99   :  { %v94_v54 = vmul.f32 %v92_v26, %v82_v50  ;;  %v138_v59 = vpop.permute.xlu0 %137 }
  0x9b   :  { %v98_v57 = vadd.f32 %v94_v54, %v73_v55  ;;  %v163_v11 = vpop.permute.xlu2 %162 }
  0xa1   :  { %v107_v56 = vpop.permute.xlu1 %106 }
  0xa2   :  { %v119_v58 = vmul.f32 %v117_v31, %v107_v56 }
  0xa4   :  { %v123_v60 = vadd.f32 %v119_v58, %v98_v57 }
  0xa6   :  { %v151_v61 = vadd.f32 %v138_v59, %v123_v60 }
  0xa8   :  { %v155_v0 = vmax.f32 %v151_v61, 0.0 }
  0xa9   :  { %v103_v1 = vpop.permute.xlu1 %102 }
  0xaa   :  { %183 = vmatpush.msra.mxu0 %v155_v0  ;;  %v118_v4 = vmul.f32 %v117_v31, %v103_v1 }
  0xac   :  { %v122_v6 = vadd.f32 %v118_v4, %v97_v5 }
  0xb2   :  { %v133_v7 = vpop.permute.xlu1 %132 }
  0xb3   :  { %v150_v8 = vadd.f32 %v133_v7, %v122_v6 }
  0xb5   :  { %v154_v9 = vmax.f32 %v150_v8, 0.0 }
  0xb7   :  { %184 = vmatpush.msra.mxu0 %v154_v9 }
  0xb8   :  { %206 = vmatmul.msk.f32.vlgmr.msra.gmra.mxu0 %vm165_vm0, %v158_v10 }
 0x135   :  { %v186_v12 = vpop.f32.mrf.mxu0 }
 0x136   :  { %v187_v13 = vadd.f32 %v186_v12, %v163_v11 }
 0x138   :  { %189 = vst [vmem:[#allocation2] sm:$0x3] %v187_v13 }
 0x139   :  { %200 = dma.vmem_to_hbm [thread:$0]  %s196_s12, 32, %s198_s15, [#allocation3]  }
 0x13a   :  { %253 = dma.done.wait [#allocation3], 32  }
 0x13b   :  { %254 = vsyncadd [#allocation3], 4294967264 }
 0x13c   :  { %205 = vsyncpa [#allocation3], 1 }

</bundles_post_ra>
